<compile_context>
chip_gen: v7x
topology: tpu7x:2x2x1
jax: 0.10.0
libtpu: 0.0.40
codegen_flags: <defaults>
</compile_context>

<pallas_src>
import functools

import jax
import jax.numpy as jnp
from jax.experimental import pallas as pl
from jax.experimental.pallas import tpu as pltpu


# Contract the last (feature) dim of both operands: out[m, n] = sum_k lhs[m, k] * rhs[n, k]
_NT_DIM_NUMBERS = (((1,), (1,)), ((), ()))


def _round_up(n: int, m: int) -> int:
    return ((n + m - 1) // m) * m


def _device_kind() -> str:
    try:
        return jax.devices()[0].device_kind.lower()
    except Exception:
        return ""


def _default_num_tensorcores() -> int:
    # v7x exposes 2 TensorCores per chip to the "parallel" grid axis; v5e/v6e see 1.
    return 2 if "v7" in _device_kind() else 1


def _default_epilogue_dtype():
    # bf16 VALU is native on v6e/v7x; older chips (v5e etc.) keep the epilogue in f32.
    kind = _device_kind()
    if "v6" in kind or "v7" in kind:
        return jnp.bfloat16
    return jnp.float32


def _mlp_kernel(x_ref, w1_ref, b1_ref, w2_ref, b2_ref, w3_ref, b3_ref, o_ref,
                *, n_sub: int, ep_dtype):
    # Resident weights / biases: loaded once per grid step, hoisted out of the chunk loop.
    w1 = w1_ref[...]            # (D,  H1)  compute dtype (bf16)
    w2 = w2_ref[...]            # (H1, H2)  compute dtype (bf16)
    w3 = w3_ref[...]            # (1,  H2)  compute dtype (bf16), row vector
    b1 = b1_ref[...]            # (1,  H1)  epilogue dtype
    b2 = b2_ref[...]            # (1,  H2)  epilogue dtype
    b3 = b3_ref[0]              # scalar f32 from SMEM

    bm = x_ref.shape[0]
    cm = bm // n_sub            # rows per sub-chunk (static)

    # Statically unrolled sub-chunk loop: overlaps chunk j+1's MXU work with chunk j's
    # VPU epilogue and bounds the live h footprint.
    for c in range(n_sub):
        r0 = c * cm
        x = x_ref[pl.ds(r0, cm), :].astype(w1.dtype)

        # Layer 1: Linear(D -> H1) + ReLU  (bf16 MXU matmul, f32 accumulate).
        h = jnp.dot(x, w1, preferred_element_type=jnp.float32)
        h = jnp.maximum(h.astype(ep_dtype) + b1, 0)

        # Layer 2: Linear(H1 -> H2) + ReLU.
        h = jnp.dot(h.astype(w2.dtype), w2, preferred_element_type=jnp.float32)
        h = jnp.maximum(h.astype(ep_dtype) + b2, 0)

        # Layer 3: Linear(H2 -> 1) as an NT contraction of w3 (1,H2) with h (cm,H2):
        # single bf16 MXU pass, result lands as a lane-dense (1, cm) row -> unmasked
        # full-lane output stores.
        out = jax.lax.dot_general(w3, h.astype(w3.dtype), _NT_DIM_NUMBERS,
                                  preferred_element_type=jnp.float32)
        o_ref[:, pl.ds(r0, cm)] = (out + b3).astype(o_ref.dtype)


def dense_value_network(x, params, *, bm=4096, compute_dtype=jnp.bfloat16,
                        ep_dtype=None, num_tensorcores=None):
    """Critic MLP forward. x: (B, input_dim) float32/bfloat16 -> (B, 1) float32.

    `bm` is the batch-tile target (rows per grid step); the effective tile is rounded to
    a multiple of 128, capped by a conservative VMEM budget, and (on dual-TensorCore
    chips) the grid is kept at an even number of >= 2 steps.
    """
    (w1, b1), (w2, b2), (w3, b3) = params
    B, D = x.shape
    H1 = w1.shape[1]
    H2 = w2.shape[1]

    if ep_dtype is None:
        ep_dtype = _default_epilogue_dtype()
    if num_tensorcores is None:
        num_tensorcores = _default_num_tensorcores()

    # ---- Batch-tile policy --------------------------------------------------------------
    bm_req = _round_up(max(int(bm), 128), 128)

    # VMEM budget cap (double-buffered x tile + f32/epilogue copies of h1/h2 + output),
    # kept far under v5e's 16 MiB scoped default so no vmem_limit_bytes bump is needed.
    row_bytes = 2 * 4 * D + 8 * H1 + 8 * H2 + 8          # conservative f32 estimate / row
    vmem_budget = 10 * 1024 * 1024
    vmem_rows = max(128, (vmem_budget // max(row_bytes, 1)) // 128 * 128)
    bm_req = min(bm_req, vmem_rows)

    b_pad128 = _round_up(B, 128)
    g = pl.cdiv(b_pad128, bm_req)                        # steps needed at the requested tile
    min_g = min(num_tensorcores, b_pad128 // 128)        # enough 128-row blocks to split?
    g = max(g, min_g)
    if num_tensorcores > 1 and g > 1:
        g = _round_up(g, num_tensorcores)                # even work per TensorCore (v7x)
    bm_eff = min(bm_req, _round_up(pl.cdiv(B, g), 128))  # minimize padding waste

    b_pad = _round_up(B, bm_eff)
    grid = (b_pad // bm_eff,)

    if b_pad != B:
        x = jnp.pad(x, ((0, b_pad - B), (0, 0)))

    # Sub-chunking: largest of {4, 2} keeping chunks a multiple of 128 lanes and >= 256 rows.
    n_sub = 1
    blocks128 = bm_eff // 128
    for cand in (4, 2):
        if blocks128 % cand == 0 and bm_eff // cand >= 256:
            n_sub = cand
            break

    # Operands in their kernel dtypes.
    w1c = w1.astype(compute_dtype)
    w2c = w2.astype(compute_dtype)
    w3r = w3.reshape(1, H2).astype(compute_dtype)        # row vector for the NT contraction
    b1r = b1.reshape(1, H1).astype(ep_dtype)
    b2r = b2.reshape(1, H2).astype(ep_dtype)
    b3s = b3.reshape(1).astype(jnp.float32)              # scalar, passed through SMEM

    kernel = functools.partial(_mlp_kernel, n_sub=n_sub, ep_dtype=ep_dtype)

    out_row = pl.pallas_call(
        kernel,
        out_shape=jax.ShapeDtypeStruct((1, b_pad), jnp.float32),
        grid_spec=pl.GridSpec(
            grid=grid,
            in_specs=[
                pl.BlockSpec((bm_eff, D), lambda i: (i, 0)),        # x tile (batch-tiled)
                pl.BlockSpec((D, H1), lambda i: (0, 0)),            # W1 (VMEM-resident)
                pl.BlockSpec((1, H1), lambda i: (0, 0)),            # b1
                pl.BlockSpec((H1, H2), lambda i: (0, 0)),           # W2 (VMEM-resident)
                pl.BlockSpec((1, H2), lambda i: (0, 0)),            # b2
                pl.BlockSpec((1, H2), lambda i: (0, 0)),            # w3 row
                pl.BlockSpec(memory_space=pltpu.MemorySpace.SMEM),  # b3 scalar in SMEM
            ],
            out_specs=pl.BlockSpec((1, bm_eff), lambda i: (0, i)),  # lane-dense output row
        ),
        compiler_params=pltpu.CompilerParams(
            dimension_semantics=("parallel",),
        ),
    )(x, w1c, b1r, w2c, b2r, w3r, b3s)

    # (1, b_pad) row -> (B, 1) column (contiguity-preserving metadata reshape + slice).
    return out_row.reshape(b_pad, 1)[:B]


def init_params(key, input_dim, hidden_dim=(128, 64)):
    """Deterministic init mimicking nn.Linear default (uniform +-1/sqrt(fan_in)).
    Weights are stored as (in_features, out_features) — already transposed vs PyTorch."""
    dims = (input_dim,) + tuple(hidden_dim) + (1,)
    params = []
    for fan_in, fan_out in zip(dims[:-1], dims[1:]):
        key, kw, kb = jax.random.split(key, 3)
        bound = 1.0 / jnp.sqrt(float(fan_in))
        w = jax.random.uniform(kw, (fan_in, fan_out), jnp.float32, -bound, bound)
        b = jax.random.uniform(kb, (fan_out,), jnp.float32, -bound, bound)
        params.append((w, b))
    return params


def reference_forward(x, params, compute_dtype=jnp.float32, ep_dtype=jnp.float32):
    """Pure-JAX reference mirroring the kernel's matmul / epilogue precision."""
    (w1, b1), (w2, b2), (w3, b3) = params
    h = jnp.dot(x.astype(compute_dtype), w1.astype(compute_dtype),
                preferred_element_type=jnp.float32)
    h = jnp.maximum(h.astype(ep_dtype) + b1.astype(ep_dtype), 0)
    h = jnp.dot(h.astype(compute_dtype), w2.astype(compute_dtype),
                preferred_element_type=jnp.float32)
    h = jnp.maximum(h.astype(ep_dtype) + b2.astype(ep_dtype), 0)
    out = jnp.dot(h.astype(compute_dtype), w3.astype(compute_dtype),
                  preferred_element_type=jnp.float32) + b3
    return out


if __name__ == "__main__":
    key = jax.random.PRNGKey(0)
    k_x, k_p, k_x2, k_x3 = jax.random.split(key, 4)

    batch, input_dim = 8, 32
    hidden_dim = (128, 64)

    x = jax.random.normal(k_x, (batch, input_dim), jnp.float32)
    params = init_params(k_p, input_dim, hidden_dim)

    ep = _default_epilogue_dtype()
    fwd = jax.jit(functools.partial(dense_value_network, ep_dtype=ep))

    out = jax.block_until_ready(fwd(x, params))
    assert out.shape == (batch, 1)

    # Tight check vs. a reference using the same bf16-matmul / epilogue precision.
    ref_match = reference_forward(x, params, compute_dtype=jnp.bfloat16, ep_dtype=ep)
    assert jnp.allclose(out, ref_match, atol=2e-3, rtol=2e-3), \
        float(jnp.max(jnp.abs(out - ref_match)))
    # Loose sanity check vs. the pure-f32 reference (bf16 rounding only).
    ref_f32 = reference_forward(x, params)
    assert jnp.allclose(out, ref_f32, atol=5e-2, rtol=5e-2), \
        float(jnp.max(jnp.abs(out - ref_f32)))

    # Non-tile-aligned batch (exercises padding and the v7x even-grid policy).
    batch2 = 520
    x2 = jax.random.normal(k_x2, (batch2, input_dim), jnp.float32)
    out2 = jax.block_until_ready(fwd(x2, params))
    assert out2.shape == (batch2, 1)
    ref2 = reference_forward(x2, params, compute_dtype=jnp.bfloat16, ep_dtype=ep)
    assert jnp.allclose(out2, ref2, atol=2e-3, rtol=2e-3), \
        float(jnp.max(jnp.abs(out2 - ref2)))

    # Larger batch: exercises the big-tile path with in-kernel sub-chunking and a
    # multi-step grid on every generation.
    batch3 = 8192
    x3 = jax.random.normal(k_x3, (batch3, input_dim), jnp.float32)
    out3 = jax.block_until_ready(fwd(x3, params))
    assert out3.shape == (batch3, 1)
    ref3 = reference_forward(x3, params, compute_dtype=jnp.bfloat16, ep_dtype=ep)
    assert jnp.allclose(out3, ref3, atol=2e-3, rtol=2e-3), \
        float(jnp.max(jnp.abs(out3 - ref3)))

    print("KERNEL_OK")
</pallas_src>

<mosaic_0001>
module attributes {stable_mosaic.version = 11 : i64} {
  func.func @_mlp_kernel(%arg0: i32, %arg1: memref<128x32xf32, #tpu.memory_space<vmem>>, %arg2: memref<32x128xbf16, #tpu.memory_space<vmem>>, %arg3: memref<1x128xf32, #tpu.memory_space<vmem>>, %arg4: memref<128x64xbf16, #tpu.memory_space<vmem>>, %arg5: memref<1x64xf32, #tpu.memory_space<vmem>>, %arg6: memref<1x64xbf16, #tpu.memory_space<vmem>>, %arg7: memref<1xf32, #tpu.memory_space<smem>>, %arg8: memref<1x128xf32, #tpu.memory_space<vmem>>) attributes {dimension_semantics = [#tpu.dimension_semantics<parallel>], iteration_bounds = array<i64: 1>, scalar_prefetch = 0 : i64, scratch_operands = 0 : i64, tpu.core_type = #tpu.core_type<tc>, window_params = [{transform_indices = @transform_0, window_bounds = array<i64: 128, 32>}, {pipeline_mode = #tpu.pipeline_mode<synchronous>, transform_indices = @transform_1, window_bounds = array<i64: 32, 128>}, {pipeline_mode = #tpu.pipeline_mode<synchronous>, transform_indices = @transform_2, window_bounds = array<i64: 1, 128>}, {pipeline_mode = #tpu.pipeline_mode<synchronous>, transform_indices = @transform_3, window_bounds = array<i64: 128, 64>}, {pipeline_mode = #tpu.pipeline_mode<synchronous>, transform_indices = @transform_4, window_bounds = array<i64: 1, 64>}, {pipeline_mode = #tpu.pipeline_mode<synchronous>, transform_indices = @transform_5, window_bounds = array<i64: 1, 64>}, {transform_indices = @transform_6, window_bounds = array<i64: 1>}, {transform_indices = @transform_7, window_bounds = array<i64: 1, 128>}]} {
    %c0 = arith.constant 0 : index
    %c0_0 = arith.constant 0 : index
    %0 = vector.load %arg2[%c0, %c0_0] : memref<32x128xbf16, #tpu.memory_space<vmem>>, vector<32x128xbf16>
    %c0_1 = arith.constant 0 : index
    %c0_2 = arith.constant 0 : index
    %1 = vector.load %arg4[%c0_1, %c0_2] : memref<128x64xbf16, #tpu.memory_space<vmem>>, vector<128x64xbf16>
    %c0_3 = arith.constant 0 : index
    %c0_4 = arith.constant 0 : index
    %2 = vector.load %arg6[%c0_3, %c0_4] : memref<1x64xbf16, #tpu.memory_space<vmem>>, vector<1x64xbf16>
    %c0_5 = arith.constant 0 : index
    %c0_6 = arith.constant 0 : index
    %3 = vector.load %arg3[%c0_5, %c0_6] : memref<1x128xf32, #tpu.memory_space<vmem>>, vector<1x128xf32>
    %c0_7 = arith.constant 0 : index
    %c0_8 = arith.constant 0 : index
    %4 = vector.load %arg5[%c0_7, %c0_8] : memref<1x64xf32, #tpu.memory_space<vmem>>, vector<1x64xf32>
    %c0_9 = arith.constant 0 : index
    %5 = memref.load %arg7[%c0_9] : memref<1xf32, #tpu.memory_space<smem>>
    %c0_10 = arith.constant 0 : index
    %c0_11 = arith.constant 0 : index
    %6 = vector.load %arg1[%c0_10, %c0_11] : memref<128x32xf32, #tpu.memory_space<vmem>>, vector<128x32xf32>
    %7 = arith.truncf %6 : vector<128x32xf32> to vector<128x32xbf16>
    %cst = arith.constant dense<0.000000e+00> : vector<128x128xf32>
    %8 = tpu.matmul %7, %0, %cst {dimension_numbers = #tpu.dot_dimension_numbers<[1], [0], [0], [1], [0, 0, 1, 1], [], []>} : vector<128x32xbf16>, vector<32x128xbf16>, vector<128x128xf32> -> vector<128x128xf32>
    %9 = vector.broadcast %3 : vector<1x128xf32> to vector<128x128xf32>
    %10 = arith.addf %8, %9 : vector<128x128xf32>
    %cst_12 = arith.constant 0.000000e+00 : f32
    %11 = vector.broadcast %cst_12 : f32 to vector<128x128xf32>
    %12 = arith.maximumf %10, %11 : vector<128x128xf32>
    %13 = arith.truncf %12 : vector<128x128xf32> to vector<128x128xbf16>
    %cst_13 = arith.constant dense<0.000000e+00> : vector<128x64xf32>
    %14 = tpu.matmul %13, %1, %cst_13 {dimension_numbers = #tpu.dot_dimension_numbers<[1], [0], [0], [1], [0, 0, 1, 1], [], []>} : vector<128x128xbf16>, vector<128x64xbf16>, vector<128x64xf32> -> vector<128x64xf32>
    %15 = vector.broadcast %4 : vector<1x64xf32> to vector<128x64xf32>
    %16 = arith.addf %14, %15 : vector<128x64xf32>
    %cst_14 = arith.constant 0.000000e+00 : f32
    %17 = vector.broadcast %cst_14 : f32 to vector<128x64xf32>
    %18 = arith.maximumf %16, %17 : vector<128x64xf32>
    %19 = arith.truncf %18 : vector<128x64xf32> to vector<128x64xbf16>
    %cst_15 = arith.constant dense<0.000000e+00> : vector<1x128xf32>
    %20 = tpu.matmul %2, %19, %cst_15 {dimension_numbers = #tpu.dot_dimension_numbers<[1], [1], [0], [0], [0, 0, 1, 0], [], []>} : vector<1x64xbf16>, vector<128x64xbf16>, vector<1x128xf32> -> vector<1x128xf32>
    %21 = vector.broadcast %5 : f32 to vector<1x128xf32>
    %22 = arith.addf %20, %21 : vector<1x128xf32>
    %c0_16 = arith.constant 0 : index
    %c0_17 = arith.constant 0 : index
    %23 = vector.load %arg8[%c0_16, %c0_17] : memref<1x128xf32, #tpu.memory_space<vmem>>, vector<1x128xf32>
    tpu.vector_store %arg8[%c0_16, %c0_17], %22 {strides = array<i32>} : memref<1x128xf32, #tpu.memory_space<vmem>>, vector<1x128xf32>,
    return
  }
  func.func @transform_0(%arg0: i32) -> (i32, i32) {
    %c0_i32 = arith.constant 0 : i32
    %c0_i32_0 = arith.constant 0 : i32
    return %arg0, %c0_i32 : i32, i32
  }
  func.func @transform_1(%arg0: i32) -> (i32, i32) {
    %c0_i32 = arith.constant 0 : i32
    %c0_i32_0 = arith.constant 0 : i32
    %c0_i32_1 = arith.constant 0 : i32
    return %c0_i32, %c0_i32_0 : i32, i32
  }
  func.func @transform_2(%arg0: i32) -> (i32, i32) {
    %c0_i32 = arith.constant 0 : i32
    %c0_i32_0 = arith.constant 0 : i32
    %c0_i32_1 = arith.constant 0 : i32
    return %c0_i32, %c0_i32_0 : i32, i32
  }
  func.func @transform_3(%arg0: i32) -> (i32, i32) {
    %c0_i32 = arith.constant 0 : i32
    %c0_i32_0 = arith.constant 0 : i32
    %c0_i32_1 = arith.constant 0 : i32
    return %c0_i32, %c0_i32_0 : i32, i32
  }
  func.func @transform_4(%arg0: i32) -> (i32, i32) {
    %c0_i32 = arith.constant 0 : i32
    %c0_i32_0 = arith.constant 0 : i32
    %c0_i32_1 = arith.constant 0 : i32
    return %c0_i32, %c0_i32_0 : i32, i32
  }
  func.func @transform_5(%arg0: i32) -> (i32, i32) {
    %c0_i32 = arith.constant 0 : i32
    %c0_i32_0 = arith.constant 0 : i32
    %c0_i32_1 = arith.constant 0 : i32
    return %c0_i32, %c0_i32_0 : i32, i32
  }
  func.func @transform_6(%arg0: i32) -> i32 {
    %c0_i32 = arith.constant 0 : i32
    %c0_i32_0 = arith.constant 0 : i32
    return %c0_i32 : i32
  }
  func.func @transform_7(%arg0: i32) -> (i32, i32) {
    %c0_i32 = arith.constant 0 : i32
    %c0_i32_0 = arith.constant 0 : i32
    return %c0_i32, %arg0 : i32, i32
  }
}

</mosaic_0001>

<bundles_post_ra>
// kernel: dense_value_network.1
= control target key start
LH: loop header
LB: loop body
LE: loop exit
PB: predicated region body
PF: predicated region fallthrough
CT: control target
= control target key end

     0   :  { %vm94_vm0 = vcmask 261120   ;;  %vm630_vm1 = vmmov 0   ;;  %vm416_vm2 = vcmask 523264   ;;  %s790_s1 = inlined_call_operand.vmem [shape: bf16[32,128], index: 1, kind: input, shape index: {}]   ;;  %s791_s0 = inlined_call_operand.vmem [shape: f32[128,32], index: 0, kind: input, shape index: {}]   ;;  %s792_s3 = inlined_call_operand.vmem [shape: bf16[128,64], index: 3, kind: input, shape index: {}]   ;;  %s793_s2 = inlined_call_operand.vmem [shape: f32[1,128], index: 2, kind: input, shape index: {}]   ;;  %s794_s4 = inlined_call_operand.vmem [shape: f32[1,64], index: 4, kind: input, shape index: {}]   ;;  %s795_s5 = inlined_call_operand.vmem [shape: bf16[1,64], index: 5, kind: input, shape index: {}]   ;;  %s796_s6 = inlined_call_operand.<no memory space> [shape: f32[1], index: 6, kind: input, shape index: {}]   ;;  %s797_s7 = inlined_call_operand.vmem [shape: f32[1,128], index: 7, kind: output, shape index: {}]  }
   0x1   :  { %v619_v0 = vld [vmem:[%s790_s1] sm:$0xff]   ;;  %v620_v1 = vld [vmem:[%s790_s1 + $0x8] sm:$0xff]   ;;  %v54_v5 = vld [vmem:[%s791_s0 + $0x10] sm:$0xff] }
   0x2   :  { %545 = vmatprep.subr.bf16.mxu1 %v619_v0  ;;  %v52_v2 = vld [vmem:[%s791_s0] sm:$0xff]  ;;  %v53_v3 = vld [vmem:[%s791_s0 + $0x8] sm:$0xff]  ;;  %v55_v6 = vld [vmem:[%s791_s0 + $0x18] sm:$0xff] }
   0x3   :  { %546 = vmatpush3.bf16.msra.mxu1 %v619_v0  ;;  %v68_v4 = vpack.c.bf16 %v53_v3, %v52_v2  ;;  %v56_v7 = vld [vmem:[%s791_s0 + $0x20] sm:$0xff]  ;;  %v57_v8 = vld [vmem:[%s791_s0 + $0x28] sm:$0xff]  ;;  %v69_v9 = vpack.c.bf16 %v55_v6, %v54_v5  ;;  %v58_v12 = vld [vmem:[%s791_s0 + $0x30] sm:$0xff] }
   0x4   :  { %547 = vmatprep.subr.bf16.mxu1 %v620_v1  ;;  %v70_v10 = vpack.c.bf16 %v57_v8, %v56_v7  ;;  %v621_v11 = vld [vmem:[%s792_s3] sm:$0xff]   ;;  %v59_v13 = vld [vmem:[%s791_s0 + $0x38] sm:$0xff]  ;;  %v622_v14 = vld [vmem:[%s792_s3 + $0x8] sm:$0xff]  }
   0x5   :  { %549 = vmatprep.mubr.msk.bf16.mxu1 %vm94_vm0, %v68_v4  ;;  %v60_v15 = vld [vmem:[%s791_s0 + $0x40] sm:$0xff]  ;;  %v61_v16 = vld [vmem:[%s791_s0 + $0x48] sm:$0xff]  ;;  %v623_v17 = vld [vmem:[%s792_s3 + $0x10] sm:$0xff]   ;;  %v71_v18 = vpack.c.bf16 %v59_v13, %v58_v12 }
   0x6   :  { %v72_v19 = vpack.c.bf16 %v61_v16, %v60_v15  ;;  %v624_v20 = vld [vmem:[%s792_s3 + $0x18] sm:$0xff]   ;;  %v62_v21 = vld [vmem:[%s791_s0 + $0x50] sm:$0xff]  ;;  %v64_v23 = vld [vmem:[%s791_s0 + $0x60] sm:$0xff] }
   0x7   :  { %548 = vmatpush3.bf16.msra.mxu1 %v620_v1  ;;  %v63_v22 = vld [vmem:[%s791_s0 + $0x58] sm:$0xff]  ;;  %v65_v24 = vld [vmem:[%s791_s0 + $0x68] sm:$0xff]  ;;  %v625_v25 = vld [vmem:[%s792_s3 + $0x20] sm:$0xff]  }
   0x8   :  { %565 = vmatprep.subr.bf16.mxu1 %v621_v11  ;;  %v73_v26 = vpack.c.bf16 %v63_v22, %v62_v21  ;;  %v74_v27 = vpack.c.bf16 %v65_v24, %v64_v23  ;;  %v626_v28 = vld [vmem:[%s792_s3 + $0x28] sm:$0xff]   ;;  %v66_v29 = vld [vmem:[%s791_s0 + $0x70] sm:$0xff]  ;;  %v67_v30 = vld [vmem:[%s791_s0 + $0x78] sm:$0xff] }
   0x9   :  { %v75_v31 = vpack.c.bf16 %v67_v30, %v66_v29  ;;  %v627_v32 = vld [vmem:[%s792_s3 + $0x30] sm:$0xff]   ;;  %v628_v33 = vld [vmem:[%s792_s3 + $0x38] sm:$0xff]   ;;  %v489_v34 = vld [vmem:[%s793_s2] ss:$0 sm:$0xff] }
   0xa   :  { %550 = vmatmul.mubr.msk.bf16.vlgmr.msra.gmra.mrb[0].mxu1 %vm94_vm0, %v69_v9 }
   0xb   :  { %553 = vmatprep.mubr.msk.bf16.mxu1 %vm94_vm0, %v70_v10  ;;  %566 = vmatpush3.bf16.msra.mxu1 %v621_v11 }
   0xc   :  { %567 = vmatprep.subr.bf16.mxu1 %v622_v14 }
   0xf   :  { %568 = vmatpush3.bf16.msra.mxu1 %v622_v14 }
  0x10   :  { %569 = vmatprep.subr.bf16.mxu1 %v623_v17 }
  0x12   :  { %554 = vmatmul.mubr.msk.bf16.gmra.mrb[4].mxu1 %vm94_vm0, %v71_v18 }
  0x13   :  { %557 = vmatprep.mubr.msk.bf16.mxu1 %vm94_vm0, %v72_v19  ;;  %570 = vmatpush3.bf16.msra.mxu1 %v623_v17 }
  0x14   :  { %571 = vmatprep.subr.bf16.mxu1 %v624_v20 }
  0x17   :  { %572 = vmatpush3.bf16.msra.mxu1 %v624_v20 }
  0x18   :  { %573 = vmatprep.subr.bf16.mxu1 %v625_v25 }
  0x1a   :  { %558 = vmatmul.mubr.msk.bf16.gmra.mrb[8].mxu1 %vm94_vm0, %v73_v26 }
  0x1b   :  { %561 = vmatprep.mubr.msk.bf16.mxu1 %vm94_vm0, %v74_v27  ;;  %574 = vmatpush3.bf16.msra.mxu1 %v625_v25  ;;  %v629_v27 = vmov 0.0  }
  0x1c   :  { %575 = vmatprep.subr.bf16.mxu1 %v626_v28  ;;  %597 = vmatprep.subr.bf16.mxu0 %v629_v27 }
  0x1d   :  { %613 = vmatprep.mubr.msk.bf16.mxu0 %vm630_vm1, %v629_v27 }
  0x1f   :  { %576 = vmatpush3.bf16.msra.mxu1 %v626_v28  ;;  %v500_v28 = vld [vmem:[%s794_s4] ss:$0 sm:$0xff] }
  0x20   :  { %577 = vmatprep.subr.bf16.mxu1 %v627_v32 }
  0x22   :  { %562 = vmatmul.mubr.msk.bf16.gmra.mrb[12].mxu1 %vm94_vm0, %v75_v31 }
  0x23   :  { %578 = vmatpush3.bf16.msra.mxu1 %v627_v32 }
  0x24   :  { %579 = vmatprep.subr.bf16.mxu1 %v628_v33 }
  0x27   :  { %580 = vmatpush3.bf16.msra.mxu1 %v628_v33 }
  0xdd   :  { %v551_v35 = vpop.f32.mrb[0].mxu1 }
  0xde   :  { %v162_v36 = vadd.f32 %v551_v35, %v489_v34  ;;  %v153_v37 = vpop.f32.mrb[1].mxu1 }
  0xdf   :  { %v154_v38 = vadd.f32 %v489_v34, %v153_v37  ;;  %v552_v39 = vpop.f32.mrb[2].mxu1 }
  0xe0   :  { %v165_v40 = vadd.f32 %v552_v39, %v489_v34  ;;  %v156_v41 = vpop.f32.mrb[3].mxu1  ;;  %v218_v43 = vmax.f32 %v162_v36, 0.0 }
  0xe1   :  { %v157_v42 = vadd.f32 %v489_v34, %v156_v41  ;;  %v216_v45 = vmax.f32 %v154_v38, 0.0 }
  0xe2   :  { %v219_v44 = vmax.f32 %v165_v40, 0.0 }
  0xe3   :  { %v217_v46 = vmax.f32 %v157_v42, 0.0 }
  0xe4   :  { %v233_v47 = vpack.c.bf16 %v219_v44, %v218_v43 }
  0xe5   :  { %v232_v48 = vpack.c.bf16 %v217_v46, %v216_v45  ;;  %v555_v49 = vpop.f32.mrb[4].mxu1 }
  0xe6   :  { %v178_v50 = vadd.f32 %v555_v49, %v489_v34  ;;  %v169_v51 = vpop.f32.mrb[5].mxu1 }
  0xe7   :  { %v170_v52 = vadd.f32 %v489_v34, %v169_v51  ;;  %581 = vmatprep.mubr.bf16.mxu1 %v232_v48  ;;  %v556_v53 = vpop.f32.mrb[6].mxu1 }
  0xe8   :  { %v222_v54 = vmax.f32 %v178_v50, 0.0  ;;  %v181_v55 = vadd.f32 %v556_v53, %v489_v34  ;;  %582 = vmatmul.mubr.bf16.vlgmr.msra.gmra.mrb[16].mxu1 %v233_v47  ;;  %v172_v56 = vpop.f32.mrb[7].mxu1 }
  0xe9   :  { %v220_v57 = vmax.f32 %v170_v52, 0.0  ;;  %v173_v58 = vadd.f32 %v489_v34, %v172_v56 }
  0xea   :  { %v223_v59 = vmax.f32 %v181_v55, 0.0 }
  0xeb   :  { %v221_v60 = vmax.f32 %v173_v58, 0.0 }
  0xec   :  { %v235_v61 = vpack.c.bf16 %v223_v59, %v222_v54 }
  0xed   :  { %v234_v62 = vpack.c.bf16 %v221_v60, %v220_v57  ;;  %v559_v63 = vpop.f32.mrb[8].mxu1 }
  0xee   :  { %v194_v0 = vadd.f32 %v559_v63, %v489_v34  ;;  %v185_v1 = vpop.f32.mrb[9].mxu1 }
  0xef   :  { %585 = vmatprep.mubr.bf16.mxu1 %v234_v62  ;;  %v186_v2 = vadd.f32 %v489_v34, %v185_v1  ;;  %v560_v3 = vpop.f32.mrb[10].mxu1 }
  0xf0   :  { %586 = vmatmul.mubr.bf16.gmra.mrb[20].mxu1 %v235_v61  ;;  %v226_v4 = vmax.f32 %v194_v0, 0.0  ;;  %v197_v5 = vadd.f32 %v560_v3, %v489_v34  ;;  %v188_v6 = vpop.f32.mrb[11].mxu1 }
  0xf1   :  { %v224_v7 = vmax.f32 %v186_v2, 0.0  ;;  %v189_v8 = vadd.f32 %v489_v34, %v188_v6 }
  0xf2   :  { %v227_v9 = vmax.f32 %v197_v5, 0.0 }
  0xf3   :  { %v225_v10 = vmax.f32 %v189_v8, 0.0 }
  0xf4   :  { %v237_v11 = vpack.c.bf16 %v227_v9, %v226_v4 }
  0xf5   :  { %v236_v12 = vpack.c.bf16 %v225_v10, %v224_v7  ;;  %v563_v13 = vpop.f32.mrb[12].mxu1 }
  0xf6   :  { %v210_v14 = vadd.f32 %v563_v13, %v489_v34  ;;  %v201_v15 = vpop.f32.mrb[13].mxu1 }
  0xf7   :  { %589 = vmatprep.mubr.bf16.mxu1 %v236_v12  ;;  %v202_v16 = vadd.f32 %v489_v34, %v201_v15  ;;  %v564_v17 = vpop.f32.mrb[14].mxu1 }
  0xf8   :  { %590 = vmatmul.mubr.bf16.gmra.mrb[24].mxu1 %v237_v11  ;;  %v230_v18 = vmax.f32 %v210_v14, 0.0  ;;  %v213_v19 = vadd.f32 %v564_v17, %v489_v34  ;;  %v204_v20 = vpop.f32.mrb[15].mxu1 }
  0xf9   :  { %v228_v21 = vmax.f32 %v202_v16, 0.0  ;;  %v205_v22 = vadd.f32 %v489_v34, %v204_v20 }
  0xfa   :  { %v231_v23 = vmax.f32 %v213_v19, 0.0 }
  0xfb   :  { %v229_v24 = vmax.f32 %v205_v22, 0.0 }
  0xfc   :  { %v239_v25 = vpack.c.bf16 %v231_v23, %v230_v18 }
  0xfd   :  { %v238_v26 = vpack.c.bf16 %v229_v24, %v228_v21 }
  0xff   :  { %593 = vmatprep.mubr.bf16.mxu1 %v238_v26 }
 0x100   :  { %594 = vmatmul.mubr.bf16.gmra.mrb[28].mxu1 %v239_v25 }
 0x1bb   :  { %v583_v29 = vpop.f32.mrb[16].mxu1 }
 0x1bc   :  { %v337_v30 = vadd.f32 %v583_v29, %v500_v28  ;;  %v328_v31 = vpop.f32.mrb[17].mxu1 }
 0x1bd   :  { %v329_v32 = vadd.f32 %v500_v28, %v328_v31  ;;  %v584_v33 = vpop.f32.mrb[18].mxu1  ;;  %v415_v31 = vstv %s796_s6 }
 0x1be   :  { %v340_v34 = vadd.f32 %v584_v33, %v500_v28  ;;  %v331_v35 = vpop.f32.mrb[19].mxu1  ;;  %v393_v37 = vmax.f32 %v337_v30, 0.0  ;;  %v48_v30 = vld [vmem:[%s795_s5] sm:$0x1] }
 0x1bf   :  { %v332_v36 = vadd.f32 %v500_v28, %v331_v35  ;;  %v391_v39 = vmax.f32 %v329_v32, 0.0 }
 0x1c0   :  { %v394_v38 = vmax.f32 %v340_v34, 0.0 }
 0x1c1   :  { %v392_v40 = vmax.f32 %v332_v36, 0.0 }
 0x1c2   :  { %v408_v41 = vpack.c.bf16 %v394_v38, %v393_v37 }
 0x1c3   :  { %v587_v42 = vpop.f32.mrb[20].mxu1  ;;  %v407_v43 = vpack.c.bf16 %v392_v40, %v391_v39 }
 0x1c4   :  { %v353_v44 = vadd.f32 %v587_v42, %v500_v28  ;;  %v344_v45 = vpop.f32.mrb[21].mxu1  ;;  %v424_v61 = vsel %vm416_vm2, %v408_v41, 0 }
 0x1c5   :  { %v345_v46 = vadd.f32 %v500_v28, %v344_v45  ;;  %v588_v47 = vpop.f32.mrb[22].mxu1  ;;  %v421_v48 = vsel %vm416_vm2, %v407_v43, 0 }
 0x1c6   :  { %v397_v49 = vmax.f32 %v353_v44, 0.0  ;;  %v356_v50 = vadd.f32 %v588_v47, %v500_v28  ;;  %598 = vmatpush3.bf16.xpose.msra.mxu0 %v421_v48  ;;  %v347_v51 = vpop.f32.mrb[23].mxu1 }
 0x1c7   :  { %v395_v52 = vmax.f32 %v345_v46, 0.0  ;;  %v348_v53 = vadd.f32 %v500_v28, %v347_v51  ;;  %599 = vmatprep.subr.bf16.mxu0 %v629_v27 }
 0x1c8   :  { %v398_v54 = vmax.f32 %v356_v50, 0.0 }
 0x1c9   :  { %v396_v55 = vmax.f32 %v348_v53, 0.0 }
 0x1ca   :  { %v410_v56 = vpack.c.bf16 %v398_v54, %v397_v49 }
 0x1cb   :  { %v409_v57 = vpack.c.bf16 %v396_v55, %v395_v52  ;;  %v591_v58 = vpop.f32.mrb[24].mxu1 }
 0x1cc   :  { %v369_v59 = vadd.f32 %v591_v58, %v500_v28  ;;  %v360_v60 = vpop.f32.mrb[25].mxu1  ;;  %v430_v24 = vsel %vm416_vm2, %v410_v56, 0 }
 0x1cd   :  { %v361_v62 = vadd.f32 %v500_v28, %v360_v60  ;;  %v592_v63 = vpop.f32.mrb[26].mxu1  ;;  %v427_v12 = vsel %vm416_vm2, %v409_v57, 0 }
 0x1ce   :  { %600 = vmatpush3.bf16.xpose.msra.mxu0 %v424_v61  ;;  %v401_v0 = vmax.f32 %v369_v59, 0.0  ;;  %v372_v1 = vadd.f32 %v592_v63, %v500_v28  ;;  %v363_v2 = vpop.f32.mrb[27].mxu1 }
 0x1cf   :  { %v399_v3 = vmax.f32 %v361_v62, 0.0  ;;  %601 = vmatprep.subr.bf16.mxu0 %v629_v27  ;;  %v364_v4 = vadd.f32 %v500_v28, %v363_v2 }
 0x1d0   :  { %v402_v5 = vmax.f32 %v372_v1, 0.0 }
 0x1d1   :  { %v400_v6 = vmax.f32 %v364_v4, 0.0 }
 0x1d2   :  { %v412_v7 = vpack.c.bf16 %v402_v5, %v401_v0 }
 0x1d3   :  { %v411_v8 = vpack.c.bf16 %v400_v6, %v399_v3  ;;  %v595_v9 = vpop.f32.mrb[28].mxu1 }
 0x1d4   :  { %v385_v10 = vadd.f32 %v595_v9, %v500_v28  ;;  %v376_v11 = vpop.f32.mrb[29].mxu1  ;;  %v436_v26 = vsel %vm416_vm2, %v412_v7, 0 }
 0x1d5   :  { %v377_v13 = vadd.f32 %v500_v28, %v376_v11  ;;  %v596_v14 = vpop.f32.mrb[30].mxu1  ;;  %v433_v25 = vsel %vm416_vm2, %v411_v8, 0 }
 0x1d6   :  { %602 = vmatpush3.bf16.xpose.msra.mxu0 %v427_v12  ;;  %v405_v15 = vmax.f32 %v385_v10, 0.0  ;;  %v388_v16 = vadd.f32 %v596_v14, %v500_v28  ;;  %v379_v17 = vpop.f32.mrb[31].mxu1 }
 0x1d7   :  { %603 = vmatprep.subr.bf16.mxu0 %v629_v27  ;;  %v403_v18 = vmax.f32 %v377_v13, 0.0  ;;  %v380_v19 = vadd.f32 %v500_v28, %v379_v17 }
 0x1d8   :  { %v406_v20 = vmax.f32 %v388_v16, 0.0 }
 0x1d9   :  { %v404_v21 = vmax.f32 %v380_v19, 0.0 }
 0x1da   :  { %v414_v22 = vpack.c.bf16 %v406_v20, %v405_v15 }
 0x1db   :  { %v413_v23 = vpack.c.bf16 %v404_v21, %v403_v18 }
 0x1dc   :  { %v442_v29 = vsel %vm416_vm2, %v414_v22, 0 }
 0x1dd   :  { %v439_v28 = vsel %vm416_vm2, %v413_v23, 0 }
 0x1de   :  { %604 = vmatpush3.bf16.xpose.msra.mxu0 %v430_v24 }
 0x1df   :  { %605 = vmatprep.subr.bf16.mxu0 %v629_v27 }
 0x1e6   :  { %606 = vmatpush3.bf16.xpose.msra.mxu0 %v433_v25 }
 0x1e7   :  { %607 = vmatprep.subr.bf16.mxu0 %v629_v27 }
 0x1ee   :  { %608 = vmatpush3.bf16.xpose.msra.mxu0 %v436_v26 }
 0x1ef   :  { %609 = vmatprep.subr.bf16.mxu0 %v629_v27 }
 0x1f6   :  { %610 = vmatpush3.bf16.xpose.msra.mxu0 %v439_v28 }
 0x1f7   :  { %611 = vmatprep.subr.bf16.mxu0 %v629_v27 }
 0x1fe   :  { %612 = vmatpush3.bf16.xpose.msra.mxu0 %v442_v29 }
 0x205   :  { %614 = vmatmul.mubr.msk.bf16.vlgmr.msra.gmra.mrb[0].mxu0 %vm416_vm2, %v48_v30 }
 0x2d8   :  { %v478_v32 = vpop.f32.mrb[0].mxu0 }
 0x2d9   :  { %v479_v33 = vadd.f32 %v478_v32, %v415_v31  ;;  %v615_v34 = vpop.f32.mrb[1].mxu0 }
 0x2da   :  { %v481_v35 = vpop.f32.mrb[2].mxu0 }
 0x2db   :  { %484 = vst [vmem:[%s797_s7] sm:$0x1] %v479_v33  ;;  %v616_v27 = vpop.f32.mrb[3].mxu0 }

</bundles_post_ra>
